<compile_context>
chip_gen: v7x
topology: tpu7x:2x2x1
jax: 0.10.0
libtpu: 0.0.40
codegen_flags: <defaults>
</compile_context>

<pallas_src>
import jax
import jax.numpy as jnp
import numpy as np
from jax import lax
from jax.experimental import pallas as pl
from jax.experimental.pallas import tpu as pltpu


# ---------------------------------------------------------------------------
# Kernel
# ---------------------------------------------------------------------------

def _make_tv_kernel(*, H, W, planes_per_block, n_blocks, n_inner, guard_tail,
                    has_weight, keep_diff_dtype):
    """Builds the per-block partial-sum kernel body."""
    m = planes_per_block
    R = m * H
    fold = (R % 8 == 0)

    def _fold_rows(t):
        if fold:
            # Free reshape (groups whole sublane tiles); sum(0) is pure VPU adds.
            return t.reshape(R // 8, 8, W).sum(axis=0)
        return t.sum(axis=0, keepdims=True)  # XLU sublane reduce (small R only)

    def body(x_ref, w_ref, o_ref, acc_ref):
        inner = pl.program_id(1)  # reduction axis (last grid dim)

        @pl.when(inner == 0)
        def _init():
            acc_ref[...] = jnp.zeros_like(acc_ref)

        def _accumulate():
            x = x_ref[...]
            if not keep_diff_dtype:
                x = x.astype(jnp.float32)
            # Neighbours via XLU rolls (wrap-around rows/cols are masked below).
            x_down = pltpu.roll(x, shift=R - 1, axis=0)    # x[(r + 1) % R, c]
            x_right = pltpu.roll(x, shift=W - 1, axis=1)   # x[r, (c + 1) % W]
            dh = jnp.abs(x_down - x).astype(jnp.float32)   # y_diff integrand
            dw = jnp.abs(x_right - x).astype(jnp.float32)  # x_diff integrand

            # Rank-reduced masks: vertical pairs only inside an (H, W) plane,
            # horizontal pairs only for columns < W - 1.  O(R + W) work/step.
            rip = lax.broadcasted_iota(jnp.int32, (m, H, 1), 1).reshape(R, 1)
            mask_h = (rip < (H - 1)).astype(jnp.float32)   # (R, 1)
            cid = lax.broadcasted_iota(jnp.int32, (1, W), 1)
            mask_w = (cid < (W - 1)).astype(jnp.float32)   # (1, W)

            if has_weight:
                w = w_ref[...].astype(jnp.float32)
                if w_ref.shape[0] != R:
                    # (N, 1, H, W)-style weight: one per-batch plane streamed
                    # from HBM, replicated across this block's channel planes.
                    w = jnp.broadcast_to(w.reshape(1, H, W), (m, H, W)).reshape(R, W)
                wh = w * mask_h   # masked weight; doubles as y_diff denominator
                ww = w * mask_w   # masked weight; doubles as x_diff denominator
                terms = (dh * wh, wh, dw * ww, ww)
            else:
                terms = (dh * mask_h, dw * mask_w)

            for k, t in enumerate(terms):
                acc_ref[k, :, :] += _fold_rows(t)

        if guard_tail:
            bid = pl.program_id(0) * n_inner + pl.program_id(1)

            @pl.when(bid < n_blocks)
            def _acc_if_valid():
                _accumulate()
        else:
            _accumulate()

        @pl.when(inner == pl.num_programs(1) - 1)
        def _flush():
            o_ref[...] = acc_ref[...]

    if has_weight:
        return body

    def body_no_weight(x_ref, o_ref, acc_ref):
        return body(x_ref, None, o_ref, acc_ref)

    return body_no_weight


# ---------------------------------------------------------------------------
# Tiling / wrapper
# ---------------------------------------------------------------------------

def _divisors(n):
    return [d for d in range(1, n + 1) if n % d == 0]


def _vmem_budget():
    """(per-input tile target bytes, vmem_limit_bytes), sized per TPU generation."""
    try:
        cap = int(pltpu.get_tpu_info().vmem_capacity_bytes)
    except Exception:
        cap = 64 << 20
    if cap >= (100 << 20):            # v5e / v6e: 128 MiB physical VMEM
        return 4 << 20, 64 << 20
    return 2 << 20, 40 << 20          # v7x: 64 MiB per TensorCore


def _choose_block(planes, H, W, itemsize, *, target_bytes, candidates):
    """Largest candidate planes-per-block whose (m*H, W) block fits the tile
    budget and satisfies the (8, 128) sublane constraint.  Returns None if no
    candidate is layout-legal."""
    plane_bytes = H * W * itemsize
    legal = [m for m in candidates if m == planes or (m * H) % 8 == 0]
    if not legal:
        return None
    fitting = [m for m in legal if m * plane_bytes <= target_bytes]
    # TODO(synk): intra-plane 1-row-halo tiling for planes individually larger
    # than the budget, and plane-axis padding when B*C has awkward divisors.
    return max(fitting) if fitting else min(legal)


def _tv_partial_sums(pred2d, weight2d, *, m, planes, C, H, W, weight_mode,
                     vmem_limit, keep_diff_dtype):
    """Runs the Pallas kernel; returns (n_outer, nq, S, W) partial-sum slabs."""
    has_weight = weight2d is not None
    R = m * H
    n_blocks = planes // m
    # Keep the parallel axis at 2 whenever there is more than one block so both
    # v7x TensorCores get work; odd block counts are handled by clamping the
    # index_map and skipping the duplicate step in-kernel.
    n_outer = 1 if n_blocks == 1 else 2
    n_inner = -(-n_blocks // n_outer)
    guard_tail = (n_outer * n_inner != n_blocks)

    fold = (R % 8 == 0)
    S = 8 if fold else 1
    nq = 4 if has_weight else 2

    def _bid(o, i):
        b = o * n_inner + i
        if guard_tail:
            b = jnp.minimum(b, n_blocks - 1)
        return b

    kernel = _make_tv_kernel(H=H, W=W, planes_per_block=m, n_blocks=n_blocks,
                             n_inner=n_inner, guard_tail=guard_tail,
                             has_weight=has_weight,
                             keep_diff_dtype=keep_diff_dtype)

    in_specs = [pl.BlockSpec((R, W), lambda o, i: (_bid(o, i), 0))]
    operands = [pred2d]
    if has_weight:
        if weight_mode == "c1":
            # One (H, W) weight plane per batch item; several channel blocks of
            # the same batch map to the same weight block (no HBM broadcast).
            w_spec = pl.BlockSpec((H, W), lambda o, i: (_bid(o, i) * m // C, 0))
        else:
            w_spec = pl.BlockSpec((R, W), lambda o, i: (_bid(o, i), 0))
        in_specs.append(w_spec)
        operands.append(weight2d)

    return pl.pallas_call(
        kernel,
        out_shape=jax.ShapeDtypeStruct((n_outer, nq, S, W), jnp.float32),
        grid_spec=pltpu.PrefetchScalarGridSpec(
            num_scalar_prefetch=0,
            grid=(n_outer, n_inner),
            in_specs=in_specs,
            out_specs=pl.BlockSpec((None, nq, S, W), lambda o, i: (o, 0, 0, 0)),
            scratch_shapes=[pltpu.VMEM((nq, S, W), jnp.float32)],
        ),
        compiler_params=pltpu.CompilerParams(
            dimension_semantics=("parallel", "arbitrary"),
            vmem_limit_bytes=vmem_limit,
        ),
    )(*operands)


def weighted_tv_loss(pred, weight=None, *, loss_weight=1.0, keep_diff_dtype=False):
    """Pallas TPU implementation of WeightedTVLoss(loss_weight).forward(pred, weight).

    keep_diff_dtype=True keeps the neighbour subtract/abs in the input dtype
    (bf16 fast path for v6e/v7x); accumulation is always f32.
    """
    assert pred.ndim == 4, "pred must be (N, C, H, W)"
    B, C, H, W = pred.shape
    planes = B * C
    itemsize = jnp.dtype(pred.dtype).itemsize
    target_bytes, vmem_limit = _vmem_budget()

    weight_mode = "none"
    weight2d = None
    m = None
    if weight is not None:
        assert weight.ndim == 4 and weight.shape[0] == B
        assert weight.shape[1] in (1, C) and weight.shape[2:] == (H, W)
        if weight.shape[1] == 1 and C > 1 and (H % 8 == 0 or B == 1):
            # Stream the (N, 1, H, W) weight once; replicate across channels in
            # the kernel.  Blocks are then constrained to one batch item
            # (m must divide C).
            m = _choose_block(planes, H, W, itemsize, target_bytes=target_bytes,
                              candidates=_divisors(C))
            if m is not None:
                weight_mode = "c1"
                weight2d = weight.reshape(B * H, W)
        if weight_mode == "none":
            weight_mode = "full"
            w_full = weight if weight.shape[1] == C else jnp.broadcast_to(weight, pred.shape)
            weight2d = w_full.reshape(planes * H, W)
    if m is None:
        # m == planes is always legal, so this never returns None.
        m = _choose_block(planes, H, W, itemsize, target_bytes=target_bytes,
                          candidates=_divisors(planes))

    pred2d = pred.reshape(planes * H, W)  # free reshape; keep native dtype

    out = _tv_partial_sums(pred2d, weight2d, m=m, planes=planes, C=C, H=H, W=W,
                           weight_mode=weight_mode, vmem_limit=vmem_limit,
                           keep_diff_dtype=keep_diff_dtype)

    sums = jnp.sum(out, axis=(0, 2, 3))  # tiny epilogue reduction in plain JAX
    if weight is not None:
        y_diff = loss_weight * sums[0] / sums[1]
        x_diff = loss_weight * sums[2] / sums[3]
    else:
        y_diff = loss_weight * sums[0] / float(planes * (H - 1) * W)
        x_diff = loss_weight * sums[1] / float(planes * H * (W - 1))
    return x_diff + y_diff


class WeightedTVLoss:
    """Mirror of the PyTorch module's constructor / forward signature."""

    def __init__(self, loss_weight=1.0):
        self.loss_weight = float(loss_weight)

    def __call__(self, pred, weight=None):
        return weighted_tv_loss(pred, weight, loss_weight=self.loss_weight)


# ---------------------------------------------------------------------------
# Pure-JAX reference (mirrors the PyTorch module) and self-test
# ---------------------------------------------------------------------------

def _weighted_tv_loss_ref(pred, weight=None, *, loss_weight=1.0):
    pred = pred.astype(jnp.float32)

    def l1_mean(a, b, w):
        l = jnp.abs(a - b)
        if w is None:
            return jnp.mean(l)
        w = w.astype(jnp.float32)
        denom = jnp.sum(w) * (l.shape[1] if w.shape[1] == 1 else 1)
        return jnp.sum(l * w) / denom

    wy = None if weight is None else weight[:, :, :-1, :]
    wx = None if weight is None else weight[:, :, :, :-1]
    y_diff = loss_weight * l1_mean(pred[:, :, :-1, :], pred[:, :, 1:, :], wy)
    x_diff = loss_weight * l1_mean(pred[:, :, :, :-1], pred[:, :, :, 1:], wx)
    return x_diff + y_diff


if __name__ == "__main__":
    key = jax.random.PRNGKey(0)
    kp, kw = jax.random.split(key)
    B, C, H, W = 2, 4, 16, 16
    pred = jax.random.uniform(kp, (B, C, H, W), dtype=jnp.float32)
    weight = jax.random.uniform(kw, (B, C, H, W), dtype=jnp.float32) + 0.5
    weight_c1 = weight[:, :1]   # (N, 1, H, W) per-batch weight map

    loss_fn = WeightedTVLoss(loss_weight=1.0)

    # Full per-channel weight (as in the module's forward, which indexes weight).
    out_w = jax.block_until_ready(loss_fn(pred, weight))
    np.testing.assert_allclose(
        np.asarray(out_w), np.asarray(_weighted_tv_loss_ref(pred, weight)),
        rtol=2e-5, atol=1e-5)

    # Single-channel weight (streamed without C-broadcast in HBM).
    out_c1 = jax.block_until_ready(loss_fn(pred, weight_c1))
    np.testing.assert_allclose(
        np.asarray(out_c1), np.asarray(_weighted_tv_loss_ref(pred, weight_c1)),
        rtol=2e-5, atol=1e-5)

    # weight=None path (plain mean-reduced TV).
    out_u = jax.block_until_ready(loss_fn(pred, None))
    np.testing.assert_allclose(
        np.asarray(out_u), np.asarray(_weighted_tv_loss_ref(pred, None)),
        rtol=2e-5, atol=1e-5)

    print("KERNEL_OK")
</pallas_src>

<mosaic_0001>
module attributes {stable_mosaic.version = 11 : i64} {
  func.func @body(%arg0: i32, %arg1: i32, %arg2: memref<128x16xf32, #tpu.memory_space<vmem>>, %arg3: memref<128x16xf32, #tpu.memory_space<vmem>>, %arg4: memref<1x4x8x16xf32, #tpu.memory_space<vmem>>, %arg5: memref<4x8x16xf32, #tpu.memory_space<vmem>>) attributes {dimension_semantics = [#tpu.dimension_semantics<parallel>, #tpu.dimension_semantics<arbitrary>], iteration_bounds = array<i64: 1, 1>, scalar_prefetch = 0 : i64, scratch_operands = 1 : i64, tpu.core_type = #tpu.core_type<tc>, window_params = [{transform_indices = @transform_0, window_bounds = array<i64: 128, 16>}, {transform_indices = @transform_1, window_bounds = array<i64: 128, 16>}, {transform_indices = @transform_2, window_bounds = array<i64: 1, 4, 8, 16>}]} {
    %c0_i32 = arith.constant 0 : i32
    %0 = arith.cmpi eq, %arg1, %c0_i32 : i32
    %1 = arith.extui %0 : i1 to i32
    %c0_i32_0 = arith.constant 0 : i32
    %2 = arith.cmpi ne, %1, %c0_i32_0 : i32
    scf.if %2 {
      %cst_32 = arith.constant 0.000000e+00 : f32
      %63 = vector.broadcast %cst_32 : f32 to vector<4x8x16xf32>
      %c0_33 = arith.constant 0 : index
      %c0_34 = arith.constant 0 : index
      %c0_35 = arith.constant 0 : index
      %64 = vector.load %arg5[%c0_33, %c0_34, %c0_35] : memref<4x8x16xf32, #tpu.memory_space<vmem>>, vector<4x8x16xf32>
      tpu.vector_store %arg5[%c0_33, %c0_34, %c0_35], %63 {strides = array<i32>} : memref<4x8x16xf32, #tpu.memory_space<vmem>>, vector<4x8x16xf32>,
    } else {
    }
    %c0 = arith.constant 0 : index
    %c0_1 = arith.constant 0 : index
    %3 = vector.load %arg2[%c0, %c0_1] : memref<128x16xf32, #tpu.memory_space<vmem>>, vector<128x16xf32>
    %c127_i32 = arith.constant 127 : i32
    %4 = tpu.dynamic_rotate %3 by %c127_i32 dim 0 : vector<128x16xf32>, i32 -> vector<128x16xf32>
    %c15_i32 = arith.constant 15 : i32
    %5 = tpu.dynamic_rotate %3 by %c15_i32 dim 1 : vector<128x16xf32>, i32 -> vector<128x16xf32>
    %6 = arith.subf %4, %3 : vector<128x16xf32>
    %7 = math.absf %6 : vector<128x16xf32>
    %8 = arith.subf %5, %3 : vector<128x16xf32>
    %9 = math.absf %8 : vector<128x16xf32>
    %10 = tpu.iota {dimensions = array<i32: 1>} : vector<8x16x1xi32>
    %11 = vector.shape_cast %10 : vector<8x16x1xi32> to vector<128x1xi32>
    %c15_i32_2 = arith.constant 15 : i32
    %12 = vector.broadcast %c15_i32_2 : i32 to vector<128x1xi32>
    %13 = arith.cmpi slt, %11, %12 : vector<128x1xi32>
    %14 = arith.extui %13 : vector<128x1xi1> to vector<128x1xi32>
    %15 = arith.sitofp %14 : vector<128x1xi32> to vector<128x1xf32>
    %16 = tpu.iota {dimensions = array<i32: 1>} : vector<1x16xi32>
    %c15_i32_3 = arith.constant 15 : i32
    %17 = vector.broadcast %c15_i32_3 : i32 to vector<1x16xi32>
    %18 = arith.cmpi slt, %16, %17 : vector<1x16xi32>
    %19 = arith.extui %18 : vector<1x16xi1> to vector<1x16xi32>
    %20 = arith.sitofp %19 : vector<1x16xi32> to vector<1x16xf32>
    %c0_4 = arith.constant 0 : index
    %c0_5 = arith.constant 0 : index
    %21 = vector.load %arg3[%c0_4, %c0_5] : memref<128x16xf32, #tpu.memory_space<vmem>>, vector<128x16xf32>
    %22 = vector.broadcast %15 : vector<128x1xf32> to vector<128x16xf32>
    %23 = arith.mulf %21, %22 : vector<128x16xf32>
    %24 = vector.broadcast %20 : vector<1x16xf32> to vector<128x16xf32>
    %25 = arith.mulf %21, %24 : vector<128x16xf32>
    %26 = arith.mulf %7, %23 : vector<128x16xf32>
    %27 = arith.mulf %9, %25 : vector<128x16xf32>
    %c0_6 = arith.constant 0 : index
    %c0_7 = arith.constant 0 : index
    %c0_8 = arith.constant 0 : index
    %28 = vector.load %arg5[%c0_6, %c0_7, %c0_8] : memref<4x8x16xf32, #tpu.memory_space<vmem>>, vector<1x8x16xf32>
    %29 = vector.shape_cast %28 : vector<1x8x16xf32> to vector<8x16xf32>
    %30 = vector.shape_cast %26 : vector<128x16xf32> to vector<16x8x16xf32>
    %cst = arith.constant dense<0.000000e+00> : vector<8x16xf32>
    %31 = vector.multi_reduction <add>, %30, %cst [0] : vector<16x8x16xf32> to vector<8x16xf32>
    %32 = arith.addf %29, %31 : vector<8x16xf32>
    %c0_9 = arith.constant 0 : index
    %c0_10 = arith.constant 0 : index
    %c0_11 = arith.constant 0 : index
    %33 = vector.load %arg5[%c0_9, %c0_10, %c0_11] : memref<4x8x16xf32, #tpu.memory_space<vmem>>, vector<1x8x16xf32>
    %34 = vector.shape_cast %33 : vector<1x8x16xf32> to vector<8x16xf32>
    %35 = vector.shape_cast %32 : vector<8x16xf32> to vector<1x8x16xf32>
    tpu.vector_store %arg5[%c0_9, %c0_10, %c0_11], %35 {strides = array<i32>} : memref<4x8x16xf32, #tpu.memory_space<vmem>>, vector<1x8x16xf32>,
    %c1 = arith.constant 1 : index
    %c0_12 = arith.constant 0 : index
    %c0_13 = arith.constant 0 : index
    %36 = vector.load %arg5[%c1, %c0_12, %c0_13] : memref<4x8x16xf32, #tpu.memory_space<vmem>>, vector<1x8x16xf32>
    %37 = vector.shape_cast %36 : vector<1x8x16xf32> to vector<8x16xf32>
    %38 = vector.shape_cast %23 : vector<128x16xf32> to vector<16x8x16xf32>
    %cst_14 = arith.constant dense<0.000000e+00> : vector<8x16xf32>
    %39 = vector.multi_reduction <add>, %38, %cst_14 [0] : vector<16x8x16xf32> to vector<8x16xf32>
    %40 = arith.addf %37, %39 : vector<8x16xf32>
    %c1_15 = arith.constant 1 : index
    %c0_16 = arith.constant 0 : index
    %c0_17 = arith.constant 0 : index
    %41 = vector.load %arg5[%c1_15, %c0_16, %c0_17] : memref<4x8x16xf32, #tpu.memory_space<vmem>>, vector<1x8x16xf32>
    %42 = vector.shape_cast %41 : vector<1x8x16xf32> to vector<8x16xf32>
    %43 = vector.shape_cast %40 : vector<8x16xf32> to vector<1x8x16xf32>
    tpu.vector_store %arg5[%c1_15, %c0_16, %c0_17], %43 {strides = array<i32>} : memref<4x8x16xf32, #tpu.memory_space<vmem>>, vector<1x8x16xf32>,
    %c2 = arith.constant 2 : index
    %c0_18 = arith.constant 0 : index
    %c0_19 = arith.constant 0 : index
    %44 = vector.load %arg5[%c2, %c0_18, %c0_19] : memref<4x8x16xf32, #tpu.memory_space<vmem>>, vector<1x8x16xf32>
    %45 = vector.shape_cast %44 : vector<1x8x16xf32> to vector<8x16xf32>
    %46 = vector.shape_cast %27 : vector<128x16xf32> to vector<16x8x16xf32>
    %cst_20 = arith.constant dense<0.000000e+00> : vector<8x16xf32>
    %47 = vector.multi_reduction <add>, %46, %cst_20 [0] : vector<16x8x16xf32> to vector<8x16xf32>
    %48 = arith.addf %45, %47 : vector<8x16xf32>
    %c2_21 = arith.constant 2 : index
    %c0_22 = arith.constant 0 : index
    %c0_23 = arith.constant 0 : index
    %49 = vector.load %arg5[%c2_21, %c0_22, %c0_23] : memref<4x8x16xf32, #tpu.memory_space<vmem>>, vector<1x8x16xf32>
    %50 = vector.shape_cast %49 : vector<1x8x16xf32> to vector<8x16xf32>
    %51 = vector.shape_cast %48 : vector<8x16xf32> to vector<1x8x16xf32>
    tpu.vector_store %arg5[%c2_21, %c0_22, %c0_23], %51 {strides = array<i32>} : memref<4x8x16xf32, #tpu.memory_space<vmem>>, vector<1x8x16xf32>,
    %c3 = arith.constant 3 : index
    %c0_24 = arith.constant 0 : index
    %c0_25 = arith.constant 0 : index
    %52 = vector.load %arg5[%c3, %c0_24, %c0_25] : memref<4x8x16xf32, #tpu.memory_space<vmem>>, vector<1x8x16xf32>
    %53 = vector.shape_cast %52 : vector<1x8x16xf32> to vector<8x16xf32>
    %54 = vector.shape_cast %25 : vector<128x16xf32> to vector<16x8x16xf32>
    %cst_26 = arith.constant dense<0.000000e+00> : vector<8x16xf32>
    %55 = vector.multi_reduction <add>, %54, %cst_26 [0] : vector<16x8x16xf32> to vector<8x16xf32>
    %56 = arith.addf %53, %55 : vector<8x16xf32>
    %c3_27 = arith.constant 3 : index
    %c0_28 = arith.constant 0 : index
    %c0_29 = arith.constant 0 : index
    %57 = vector.load %arg5[%c3_27, %c0_28, %c0_29] : memref<4x8x16xf32, #tpu.memory_space<vmem>>, vector<1x8x16xf32>
    %58 = vector.shape_cast %57 : vector<1x8x16xf32> to vector<8x16xf32>
    %59 = vector.shape_cast %56 : vector<8x16xf32> to vector<1x8x16xf32>
    tpu.vector_store %arg5[%c3_27, %c0_28, %c0_29], %59 {strides = array<i32>} : memref<4x8x16xf32, #tpu.memory_space<vmem>>, vector<1x8x16xf32>,
    %c0_i32_30 = arith.constant 0 : i32
    %60 = arith.cmpi eq, %arg1, %c0_i32_30 : i32
    %61 = arith.extui %60 : i1 to i32
    %c0_i32_31 = arith.constant 0 : i32
    %62 = arith.cmpi ne, %61, %c0_i32_31 : i32
    scf.if %62 {
      %c0_32 = arith.constant 0 : index
      %c0_33 = arith.constant 0 : index
      %c0_34 = arith.constant 0 : index
      %63 = vector.load %arg5[%c0_32, %c0_33, %c0_34] : memref<4x8x16xf32, #tpu.memory_space<vmem>>, vector<4x8x16xf32>
      %c0_35 = arith.constant 0 : index
      %c0_36 = arith.constant 0 : index
      %c0_37 = arith.constant 0 : index
      %c0_38 = arith.constant 0 : index
      %64 = vector.load %arg4[%c0_35, %c0_36, %c0_37, %c0_38] : memref<1x4x8x16xf32, #tpu.memory_space<vmem>>, vector<1x4x8x16xf32>
      %65 = vector.shape_cast %64 : vector<1x4x8x16xf32> to vector<4x8x16xf32>
      %66 = vector.shape_cast %63 : vector<4x8x16xf32> to vector<1x4x8x16xf32>
      tpu.vector_store %arg4[%c0_35, %c0_36, %c0_37, %c0_38], %66 {strides = array<i32>} : memref<1x4x8x16xf32, #tpu.memory_space<vmem>>, vector<1x4x8x16xf32>,
    } else {
    }
    return
  }
  func.func @transform_0(%arg0: i32, %arg1: i32) -> (i32, i32) {
    %c1_i32 = arith.constant 1 : i32
    %0 = arith.muli %arg0, %c1_i32 : i32
    %1 = arith.addi %0, %arg1 : i32
    %c0_i32 = arith.constant 0 : i32
    %c0_i32_0 = arith.constant 0 : i32
    return %1, %c0_i32 : i32, i32
  }
  func.func @transform_1(%arg0: i32, %arg1: i32) -> (i32, i32) {
    %c1_i32 = arith.constant 1 : i32
    %0 = arith.muli %arg0, %c1_i32 : i32
    %1 = arith.addi %0, %arg1 : i32
    %c0_i32 = arith.constant 0 : i32
    %c0_i32_0 = arith.constant 0 : i32
    return %1, %c0_i32 : i32, i32
  }
  func.func @transform_2(%arg0: i32, %arg1: i32) -> (i32, i32, i32, i32) {
    %c0_i32 = arith.constant 0 : i32
    %c0_i32_0 = arith.constant 0 : i32
    %c0_i32_1 = arith.constant 0 : i32
    %c0_i32_2 = arith.constant 0 : i32
    return %arg0, %c0_i32, %c0_i32_0, %c0_i32_1 : i32, i32, i32, i32
  }
}

</mosaic_0001>

<bundles_post_ra>
// kernel: tpu_custom_call.1
= control target key start
LH: loop header
LB: loop body
LE: loop exit
PB: predicated region body
PF: predicated region fallthrough
CT: control target
= control target key end

     0   :  { %v97_v3 = vlaneseq  ;;  %s714_s15 = smov 16   ;;  %vm60_vm0 = vcmask 130048   ;;  %v715_v12 = vmov 0.0   ;;  %s1332_s0 = inlined_call_operand.vmem [shape: f32[128,16], index: 0, kind: input, shape index: {}]   ;;  %s1333_s1 = inlined_call_operand.vmem [shape: f32[128,16], index: 1, kind: input, shape index: {}]   ;;  %s1334_s2 = inlined_call_operand.hbm [shape: f32[1,4,8,16], index: 2, kind: output, shape index: {}]  }
   0x1   :  { %v739_v0 = vld [vmem:[%s1332_s0] sm:$0xff]  ;;  %v744_v1 = vld [vmem:[%s1332_s0 + $0x10] sm:$0xff]  ;;  %v749_v2 = vld [vmem:[%s1332_s0 + $0x8] sm:$0xff]  ;;  %61 = vst.msk [vmem:[#allocation2] sm:$0xff] %vm60_vm0, %v715_v12 }
   0x2   :  { %117 = vrot.lane.b32.xlu0 %v739_v0, %s714_s15  ;;  %123 = vrot.lane.b32.xlu1 %v744_v1, %s714_s15  ;;  %v758_v4 = vld [vmem:[%s1332_s0 + $0x18] sm:$0xff]  ;;  %v81_v5 = vrot.slane %v739_v0, 1  ;;  %v82_v6 = vrot.slane %v749_v2, 1  ;;  %v83_v7 = vrot.slane %v744_v1, 1  ;;  %v766_v8 = vld [vmem:[%s1332_s0 + $0x28] sm:$0xff]  ;;  %v773_v10 = vshrl.u32 %v97_v3, 7 }
   0x3   :  { %v771_v9 = vld [vmem:[%s1332_s0 + $0x20] sm:$0xff]  ;;  %v349_v11 = vand.u32 127, %v97_v3  ;;  %62 = vst.msk [vmem:[#allocation2 + $0x8] sm:$0xff] %vm60_vm0, %v715_v12  ;;  %63 = vst.msk [vmem:[#allocation2 + $0x10] sm:$0xff] %vm60_vm0, %v715_v12  ;;  %v84_v13 = vrot.slane %v758_v4, 1  ;;  %v783_v14 = vld [vmem:[%s1332_s0 + $0x38] sm:$0xff] }
   0x4   :  { %64 = vst.msk [vmem:[#allocation2 + $0x18] sm:$0xff] %vm60_vm0, %v715_v12  ;;  %v85_v15 = vrot.slane %v771_v9, 1  ;;  %v86_v16 = vrot.slane %v766_v8, 1  ;;  %vm99_vm1 = vcmp.lt.s32.totalorder %v773_v10, 7  ;;  %v341_v17 = vadd.s32 8, %v773_v10  ;;  %v353_v24 = vld [vmem:[%s1333_s1] sm:$0xff] }
   0x5   :  { %vm350_vm2 = vcmp.lt.s32.totalorder %v349_v11, 15  ;;  %v88_v18 = vrot.slane %v783_v14, 1  ;;  %v114_v19 = vsel %vm99_vm1, %v81_v5, %v82_v6  ;;  %v113_v21 = vsel %vm99_vm1, %v82_v6, %v83_v7  ;;  %v354_v26 = vld [vmem:[%s1333_s1 + $0x8] sm:$0xff]  ;;  %v355_v28 = vld [vmem:[%s1333_s1 + $0x10] sm:$0xff]  ;;  %v356_v46 = vld [vmem:[%s1333_s1 + $0x18] sm:$0xff] }
   0x6   :  { %120 = vrot.lane.b32.xlu0 %v749_v2, %s714_s15  ;;  %126 = vrot.lane.b32.xlu1 %v758_v4, %s714_s15  ;;  %v798_v20 = vsel %vm350_vm2, 1.0, %v715_v12  ;;  %v112_v22 = vsel %vm99_vm1, %v83_v7, %v84_v13  ;;  %v213_v23 = vsub.f32 %v114_v19, %v739_v0  ;;  %v214_v25 = vsub.f32 %v113_v21, %v749_v2  ;;  %v841_v41 = vld [vmem:[%s1332_s0 + $0x30] sm:$0xff]  ;;  %v357_v51 = vld [vmem:[%s1333_s1 + $0x20] sm:$0xff] }
   0x7   :  { %vm343_vm3 = vcmp.lt.s32.totalorder %v341_v17, 15  ;;  %v215_v27 = vsub.f32 %v112_v22, %v744_v1  ;;  %v817_v29 = vmul.f32 %v798_v20, %v353_v24  ;;  %v534_v30 = vsel %vm60_vm0, %v353_v24, 0.0 }
   0x8   :  { %v821_v31 = vmul.f32 %v798_v20, %v354_v26  ;;  %v823_v32 = vsel %vm343_vm3, 1.0, %v715_v12  ;;  %v229_v33 = vand.u32 2147483647, %v213_v23  ;;  %v230_v34 = vand.u32 2147483647, %v214_v25 }
   0x9   :  { %v370_v35 = vmul.f32 %v823_v32, %v354_v26  ;;  %v231_v36 = vand.u32 2147483647, %v215_v27  ;;  %v609_v37 = vsel %vm60_vm0, %v817_v29, 0.0  ;;  %v835_v39 = vmul.f32 %v798_v20, %v355_v28 }
   0xa   :  { %132 = vrot.lane.b32.xlu1 %v766_v8, %s714_s15  ;;  %129 = vrot.lane.b32.xlu0 %v771_v9, %s714_s15  ;;  %v610_v38 = vsel %vm60_vm0, %v821_v31, 0.0  ;;  %v537_v40 = vsel %vm60_vm0, %v355_v28, 0.0  ;;  %v401_v42 = vmul.f32 %v353_v24, %v229_v33  ;;  %v111_v50 = vsel %vm99_vm1, %v84_v13, %v85_v15 }
   0xb   :  { %v402_v43 = vmul.f32 %v370_v35, %v230_v34  ;;  %v535_v44 = vsel %vm60_vm0, %v370_v35, 0.0  ;;  %v611_v45 = vadd.f32 %v610_v38, %v609_v37  ;;  %v403_v48 = vmul.f32 %v355_v28, %v231_v36 }
   0xc   :  { %v536_v47 = vadd.f32 %v535_v44, %v534_v30  ;;  %v612_v49 = vsel %vm60_vm0, %v835_v39, 0.0 }
   0xd   :  { %7 = vsyncpa [#allocation4], 0  ;;  %v499_v52 = vsel %vm60_vm0, %v401_v42, 0.0  ;;  %v500_v53 = vsel %vm60_vm0, %v402_v43, 0.0  ;;  %v613_v54 = vadd.f32 %v612_v49, %v611_v45  ;;  %v216_v55 = vsub.f32 %v111_v50, %v758_v4  ;;  %v868_v60 = vld [vmem:[%s1332_s0 + $0x48] sm:$0xff]  ;;  %v873_v61 = vld [vmem:[%s1332_s0 + $0x40] sm:$0xff] }
   0xe   :  { %138 = vrot.lane.b32.xlu1 %v783_v14, %s714_s15  ;;  %135 = vrot.lane.b32.xlu0 %v841_v41, %s714_s15  ;;  %v501_v56 = vadd.f32 %v500_v53, %v499_v52  ;;  %v502_v57 = vsel %vm60_vm0, %v403_v48, 0.0  ;;  %v538_v58 = vadd.f32 %v537_v40, %v536_v47  ;;  %v863_v59 = vmul.f32 %v798_v20, %v356_v46  ;;  %v358_v7 = vld [vmem:[%s1333_s1 + $0x28] sm:$0xff]  ;;  %v359_v19 = vld [vmem:[%s1333_s1 + $0x30] sm:$0xff]  ;;  %s716_s8 = smov 1  }
   0xf   :  { %v232_v62 = vand.u32 2147483647, %v216_v55  ;;  %v372_v63 = vmul.f32 %v823_v32, %v356_v46  ;;  %v110_v3 = vsel %vm99_vm1, %v85_v15, %v86_v16  ;;  %v881_v6 = vmul.f32 %v798_v20, %v357_v51  ;;  %v907_v28 = vld [vmem:[%s1332_s0 + $0x58] sm:$0xff]  ;;  %v912_v30 = vld [vmem:[%s1332_s0 + $0x50] sm:$0xff]  ;;  %v936_v47 = vld [vmem:[%s1332_s0 + $0x68] sm:$0xff] }
  0x10   :  { %v503_v11 = vadd.f32 %v502_v57, %v501_v56  ;;  %v614_v12 = vsel %vm60_vm0, %v863_v59, 0.0  ;;  %v217_v13 = vsub.f32 %v110_v3, %v771_v9  ;;  %v541_v17 = vsel %vm60_vm0, %v357_v51, 0.0  ;;  %v948_v52 = vld [vmem:[%s1332_s0 + $0x60] sm:$0xff] }
  0x11   :  { %v404_v15 = vmul.f32 %v372_v63, %v232_v62  ;;  %v539_v21 = vsel %vm60_vm0, %v372_v63, 0.0  ;;  %v615_v22 = vadd.f32 %v614_v12, %v613_v54  ;;  %v616_v23 = vsel %vm60_vm0, %v881_v6, 0.0  ;;  %v361_v57 = vld [vmem:[%s1333_s1 + $0x40] sm:$0xff] }
  0x12   :  { %144 = vrot.lane.b32.xlu1 %v868_v60, %s714_s15  ;;  %141 = vrot.lane.b32.xlu0 %v873_v61, %s714_s15  ;;  %v540_v24 = vadd.f32 %v539_v21, %v538_v58  ;;  %v233_v25 = vand.u32 2147483647, %v217_v13  ;;  %v87_v26 = vrot.slane %v841_v41, 1  ;;  %v902_v27 = vmul.f32 %v798_v20, %v358_v7 }
  0x13   :  { %v504_v33 = vsel %vm60_vm0, %v404_v15, 0.0  ;;  %v617_v34 = vadd.f32 %v616_v23, %v615_v22  ;;  %v374_v35 = vmul.f32 %v823_v32, %v358_v7  ;;  %v917_v36 = vmul.f32 %v798_v20, %v359_v19  ;;  %v977_v23 = vld [vmem:[%s1332_s0 + $0x78] sm:$0xff] }
  0x14   :  { %v505_v37 = vadd.f32 %v504_v33, %v503_v11  ;;  %v405_v38 = vmul.f32 %v357_v51, %v233_v25  ;;  %v542_v40 = vadd.f32 %v541_v17, %v540_v24  ;;  %v109_v42 = vsel %vm99_vm1, %v86_v16, %v87_v26  ;;  %v360_v51 = vld [vmem:[%s1333_s1 + $0x38] sm:$0xff]  ;;  %v982_v24 = vld [vmem:[%s1332_s0 + $0x70] sm:$0xff] }
  0x15   :  { %v218_v43 = vsub.f32 %v109_v42, %v766_v8  ;;  %v543_v44 = vsel %vm60_vm0, %v374_v35, 0.0  ;;  %v618_v45 = vsel %vm60_vm0, %v902_v27, 0.0  ;;  %v108_v46 = vsel %vm99_vm1, %v87_v26, %v88_v18 }
  0x16   :  { %150 = vrot.lane.b32.xlu1 %v907_v28, %s714_s15  ;;  %147 = vrot.lane.b32.xlu0 %v912_v30, %s714_s15  ;;  %v506_v16 = vsel %vm60_vm0, %v405_v38, 0.0  ;;  %v544_v48 = vadd.f32 %v543_v44, %v542_v40  ;;  %v619_v49 = vadd.f32 %v618_v45, %v617_v34  ;;  %v219_v50 = vsub.f32 %v108_v46, %v841_v41  ;;  %v362_v38 = vld [vmem:[%s1333_s1 + $0x48] sm:$0xff] }
  0x17   :  { %v507_v53 = vadd.f32 %v506_v16, %v505_v37  ;;  %v234_v54 = vand.u32 2147483647, %v218_v43  ;;  %v545_v55 = vsel %vm60_vm0, %v359_v19, 0.0  ;;  %v620_v56 = vsel %vm60_vm0, %v917_v36, 0.0 }
  0x18   :  { %v235_v58 = vand.u32 2147483647, %v219_v50  ;;  %v546_v62 = vadd.f32 %v545_v55, %v544_v48  ;;  %v621_v63 = vadd.f32 %v620_v56, %v619_v49  ;;  %v89_v3 = vrot.slane %v873_v61, 1  ;;  %v363_v49 = vld [vmem:[%s1333_s1 + $0x50] sm:$0xff] }
  0x19   :  { %v406_v7 = vmul.f32 %v374_v35, %v234_v54  ;;  %v958_v11 = vmul.f32 %v798_v20, %v360_v51  ;;  %v376_v12 = vmul.f32 %v823_v32, %v360_v51  ;;  %v90_v13 = vrot.slane %v868_v60, 1 }
  0x1a   :  { %156 = vrot.lane.b32.xlu1 %v936_v47, %s714_s15  ;;  %153 = vrot.lane.b32.xlu0 %v948_v52, %s714_s15  ;;  %v407_v17 = vmul.f32 %v359_v19, %v235_v58  ;;  %v107_v15 = vsel %vm99_vm1, %v88_v18, %v89_v3  ;;  %v971_v21 = vmul.f32 %v798_v20, %v361_v57  ;;  %v549_v22 = vsel %vm60_vm0, %v361_v57, 0.0 }
  0x1b   :  { %v508_v19 = vsel %vm60_vm0, %v406_v7, 0.0  ;;  %v220_v25 = vsub.f32 %v107_v15, %v783_v14  ;;  %v547_v18 = vsel %vm60_vm0, %v376_v12, 0.0  ;;  %v622_v26 = vsel %vm60_vm0, %v958_v11, 0.0 }
  0x1c   :  { %v509_v33 = vadd.f32 %v508_v19, %v507_v53  ;;  %v510_v34 = vsel %vm60_vm0, %v407_v17, 0.0  ;;  %v548_v35 = vadd.f32 %v547_v18, %v546_v62  ;;  %v623_v37 = vadd.f32 %v622_v26, %v621_v63 }
  0x1d   :  { %v236_v40 = vand.u32 2147483647, %v220_v25  ;;  %v106_v42 = vsel %vm99_vm1, %v89_v3, %v90_v13  ;;  %v624_v43 = vsel %vm60_vm0, %v971_v21, 0.0  ;;  %v91_v44 = vrot.slane %v912_v30, 1 }
  0x1e   :  { %162 = vrot.lane.b32.xlu1 %v977_v23, %s714_s15  ;;  %159 = vrot.lane.b32.xlu0 %v982_v24, %s714_s15  ;;  %v511_v45 = vadd.f32 %v510_v34, %v509_v33  ;;  %v221_v46 = vsub.f32 %v106_v42, %v873_v61  ;;  %v550_v16 = vadd.f32 %v549_v22, %v548_v35  ;;  %v92_v48 = vrot.slane %v907_v28, 1  ;;  %v364_v33 = vld [vmem:[%s1333_s1 + $0x58] sm:$0xff] }
  0x1f   :  { %v408_v50 = vmul.f32 %v376_v12, %v236_v40  ;;  %v625_v51 = vadd.f32 %v624_v43, %v623_v37  ;;  %v105_v53 = vsel %vm99_vm1, %v90_v13, %v91_v44  ;;  %v1010_v54 = vmul.f32 %v798_v20, %v362_v38 }
  0x20   :  { %v237_v55 = vand.u32 2147483647, %v221_v46  ;;  %v222_v56 = vsub.f32 %v105_v53, %v868_v60  ;;  %v378_v58 = vmul.f32 %v823_v32, %v362_v38  ;;  %v104_v62 = vsel %vm99_vm1, %v91_v44, %v92_v48  ;;  %v365_v44 = vld [vmem:[%s1333_s1 + $0x60] sm:$0xff] }
  0x21   :  { %v512_v63 = vsel %vm60_vm0, %v408_v50, 0.0  ;;  %v626_v3 = vsel %vm60_vm0, %v1010_v54, 0.0  ;;  %v223_v7 = vsub.f32 %v104_v62, %v912_v30  ;;  %v1021_v12 = vmul.f32 %v798_v20, %v363_v49 }
  0x22   :  { %263 = vrot.lane.b32.xlu1 %v749_v2, %s716_s8  ;;  %261 = vrot.lane.b32.xlu0 %v739_v0, %s716_s8  ;;  %v513_v13 = vadd.f32 %v512_v63, %v511_v45  ;;  %v409_v17 = vmul.f32 %v361_v57, %v237_v55  ;;  %v238_v15 = vand.u32 2147483647, %v222_v56  ;;  %v551_v22 = vsel %vm60_vm0, %v378_v58, 0.0 }
  0x23   :  { %v552_v19 = vadd.f32 %v551_v22, %v550_v16  ;;  %v627_v25 = vadd.f32 %v626_v3, %v625_v51  ;;  %v239_v18 = vand.u32 2147483647, %v223_v7  ;;  %v553_v26 = vsel %vm60_vm0, %v363_v49, 0.0  ;;  %v366_v7 = vld [vmem:[%s1333_s1 + $0x68] sm:$0xff] }
  0x24   :  { %v514_v34 = vsel %vm60_vm0, %v409_v17, 0.0  ;;  %v410_v35 = vmul.f32 %v378_v58, %v238_v15  ;;  %v628_v37 = vsel %vm60_vm0, %v1021_v12, 0.0  ;;  %v93_v57 = vrot.slane %v948_v52, 1 }
  0x25   :  { %v515_v38 = vadd.f32 %v514_v34, %v513_v13  ;;  %v411_v40 = vmul.f32 %v363_v49, %v239_v18  ;;  %v554_v42 = vadd.f32 %v553_v26, %v552_v19  ;;  %v629_v43 = vadd.f32 %v628_v37, %v627_v25  ;;  %v368_v19 = vld [vmem:[%s1333_s1 + $0x78] sm:$0xff] }
  0x26   :  { %265 = vrot.lane.b32.xlu1 %v744_v1, %s716_s8  ;;  %433 = vrot.lane.b32.xlu0 %v817_v29, %s716_s8  ;;  %v516_v45 = vsel %vm60_vm0, %v410_v35, 0.0  ;;  %v103_v46 = vsel %vm99_vm1, %v92_v48, %v93_v57  ;;  %v1047_v16 = vmul.f32 %v798_v20, %v364_v33  ;;  %v380_v49 = vmul.f32 %v823_v32, %v364_v33 }
  0x27   :  { %v517_v50 = vadd.f32 %v516_v45, %v515_v38  ;;  %v518_v51 = vsel %vm60_vm0, %v411_v40, 0.0  ;;  %v224_v53 = vsub.f32 %v103_v46, %v907_v28  ;;  %v94_v56 = vrot.slane %v936_v47, 1 }
  0x28   :  { %v555_v55 = vsel %vm60_vm0, %v380_v49, 0.0  ;;  %v630_v29 = vsel %vm60_vm0, %v1047_v16, 0.0  ;;  %v1057_v58 = vmul.f32 %v798_v20, %v365_v44  ;;  %v557_v17 = vsel %vm60_vm0, %v365_v44, 0.0 }
  0x29   :  { %v519_v48 = vadd.f32 %v518_v51, %v517_v50  ;;  %v240_v62 = vand.u32 2147483647, %v224_v53  ;;  %v556_v63 = vadd.f32 %v555_v55, %v554_v42  ;;  %v631_v3 = vadd.f32 %v630_v29, %v629_v43  ;;  %v367_v50 = vld [vmem:[%s1333_s1 + $0x70] sm:$0xff]  ;;  %s717_s1 = smov 127  }
  0x2a   :  { %267 = vrot.lane.b32.xlu1 %v758_v4, %s716_s8  ;;  %437 = vrot.lane.b32.xlu0 %v835_v39, %s716_s8  ;;  %v102_v13 = vsel %vm99_vm1, %v93_v57, %v94_v56  ;;  %v632_v15 = vsel %vm60_vm0, %v1057_v58, 0.0  ;;  %v95_v22 = vrot.slane %v982_v24, 1  ;;  %v1079_v34 = vmul.f32 %v798_v20, %v366_v7 }
  0x2b   :  { %v412_v25 = vmul.f32 %v380_v49, %v240_v62  ;;  %v225_v18 = vsub.f32 %v102_v13, %v948_v52  ;;  %v558_v26 = vadd.f32 %v557_v17, %v556_v63  ;;  %v633_v33 = vadd.f32 %v632_v15, %v631_v3 }
  0x2c   :  { %v101_v39 = vsel %vm99_vm1, %v94_v56, %v95_v22  ;;  %v382_v35 = vmul.f32 %v823_v32, %v366_v7  ;;  %v96_v37 = vrot.slane %v977_v23, 1  ;;  %v1086_v42 = vmul.f32 %v798_v20, %v368_v19 }
  0x2d   :  { %v520_v57 = vsel %vm60_vm0, %v412_v25, 0.0  ;;  %v241_v38 = vand.u32 2147483647, %v225_v18  ;;  %v226_v40 = vsub.f32 %v101_v39, %v936_v47  ;;  %v634_v46 = vsel %vm60_vm0, %v1079_v34, 0.0  ;;  %v533_v18 = vld [vmem:[#allocation2 + $0x8] sm:$0xff] }
  0x2e   :  { %435 = vrot.lane.b32.xlu1 %v821_v31, %s716_s8  ;;  %271 = vrot.lane.b32.xlu0 %v766_v8, %s716_s8  ;;  %v521_v43 = vadd.f32 %v520_v57, %v519_v48  ;;  %v559_v45 = vsel %vm60_vm0, %v382_v35, 0.0  ;;  %v115_v49 = vsel %vm99_vm1, %v96_v37, %v81_v5  ;;  %v635_v55 = vadd.f32 %v634_v46, %v633_v33 }
  0x2f   :  { %v413_v51 = vmul.f32 %v365_v44, %v241_v38  ;;  %v242_v31 = vand.u32 2147483647, %v226_v40  ;;  %v560_v53 = vadd.f32 %v559_v45, %v558_v26  ;;  %v228_v29 = vsub.f32 %v115_v49, %v977_v23  ;;  %v497_v45 = vld [vmem:[#allocation2] sm:$0xff] }
  0x30   :  { %v384_v56 = vmul.f32 %v823_v32, %v368_v19  ;;  %v638_v48 = vsel %vm60_vm0, %v1086_v42, 0.0  ;;  %v100_v62 = vsel %vm99_vm1, %v95_v22, %v96_v37  ;;  %v1111_v44 = vmul.f32 %v798_v20, %v367_v50 }
  0x31   :  { %v522_v5 = vsel %vm60_vm0, %v413_v51, 0.0  ;;  %v414_v63 = vmul.f32 %v382_v35, %v242_v31  ;;  %v227_v3 = vsub.f32 %v100_v62, %v982_v24  ;;  %v244_v7 = vand.u32 2147483647, %v228_v29 }
  0x32   :  { %269 = vrot.lane.b32.xlu1 %v771_v9, %s716_s8  ;;  %441 = vrot.lane.b32.xlu0 %v881_v6, %s716_s8  ;;  %v523_v32 = vadd.f32 %v522_v5, %v521_v43  ;;  %v563_v13 = vsel %vm60_vm0, %v384_v56, 0.0  ;;  %v561_v10 = vsel %vm60_vm0, %v367_v50, 0.0  ;;  %v636_v20 = vsel %vm60_vm0, %v1111_v44, 0.0  ;;  %v608_v6 = vld [vmem:[#allocation2 + $0x18] sm:$0xff] }
  0x33   :  { %v524_v17 = vsel %vm60_vm0, %v414_v63, 0.0  ;;  %v243_v15 = vand.u32 2147483647, %v227_v3  ;;  %v562_v22 = vadd.f32 %v561_v10, %v560_v53  ;;  %v416_v25 = vmul.f32 %v384_v56, %v244_v7 }
  0x34   :  { %v525_v19 = vadd.f32 %v524_v17, %v523_v32  ;;  %v637_v26 = vadd.f32 %v636_v20, %v635_v55  ;;  %vm116_vm4 = vcmask 1047680   ;;  %vm569_vm5 = vcmask 138248  }
  0x35   :  { %v415_v33 = vmul.f32 %v367_v50, %v243_v15  ;;  %v564_v39 = vadd.f32 %v563_v13, %v562_v22  ;;  %v528_v37 = vsel %vm60_vm0, %v416_v25, 0.0 }
  0x36   :  { %439 = vrot.lane.b32.xlu1 %v863_v59, %s716_s8  ;;  %275 = vrot.lane.b32.xlu0 %v783_v14, %s716_s8  ;;  %v639_v35 = vadd.f32 %v638_v48, %v637_v26 }
  0x37   :  { %v526_v57 = vsel %vm60_vm0, %v415_v33, 0.0  ;;  %v565_v38 = vadd.f32 %v564_v39, %v533_v18 }
  0x38   :  { %v527_v40 = vadd.f32 %v526_v57, %v525_v19  ;;  %v640_v43 = vadd.f32 %v639_v35, %v608_v6 }
  0x39   :  { %566 = vst.msk [vmem:[#allocation2 + $0x8] sm:$0xff] %vm60_vm0, %v565_v38 }
  0x3a   :  { %273 = vrot.lane.b32.xlu1 %v841_v41, %s716_s8  ;;  %445 = vrot.lane.b32.xlu0 %v917_v36, %s716_s8  ;;  %v529_v59 = vadd.f32 %v528_v37, %v527_v40  ;;  %641 = vst.msk [vmem:[#allocation2 + $0x18] sm:$0xff] %vm60_vm0, %v640_v43 }
  0x3c   :  { %v530_v46 = vadd.f32 %v529_v59, %v497_v45 }
  0x3e   :  { %443 = vrot.lane.b32.xlu1 %v902_v27, %s716_s8  ;;  %279 = vrot.lane.b32.xlu0 %v868_v60, %s716_s8  ;;  %531 = vst.msk [vmem:[#allocation2] sm:$0xff] %vm60_vm0, %v530_v46 }
  0x42   :  { %277 = vrot.lane.b32.xlu1 %v873_v61, %s716_s8  ;;  %449 = vrot.lane.b32.xlu0 %v971_v21, %s716_s8 }
  0x46   :  { %447 = vrot.lane.b32.xlu1 %v958_v11, %s716_s8  ;;  %283 = vrot.lane.b32.xlu0 %v907_v28, %s716_s8 }
  0x4a   :  { %281 = vrot.lane.b32.xlu1 %v912_v30, %s716_s8  ;;  %453 = vrot.lane.b32.xlu0 %v1021_v12, %s716_s8 }
  0x4e   :  { %451 = vrot.lane.b32.xlu1 %v1010_v54, %s716_s8  ;;  %287 = vrot.lane.b32.xlu0 %v936_v47, %s716_s8 }
  0x52   :  { %285 = vrot.lane.b32.xlu1 %v948_v52, %s716_s8 }
  0x56   :  { %455 = vrot.lane.b32.xlu1 %v1047_v16, %s716_s8 }
  0x74   :  { %v118_v27 = vpop.permute.xlu0 %117  ;;  %v124_v36 = vpop.permute.xlu1 %123 }
  0x75   :  { %v119_v11 = vsel %vm116_vm4, %v118_v27, %v739_v0  ;;  %v125_v16 = vsel %vm116_vm4, %v124_v36, %v744_v1 }
  0x76   :  { %165 = vrot.lane.b32.xlu0 %v119_v11, %s714_s15 }
  0x78   :  { %v121_v21 = vpop.permute.xlu0 %120  ;;  %v127_v12 = vpop.permute.xlu1 %126 }
  0x79   :  { %v122_v54 = vsel %vm116_vm4, %v121_v21, %v749_v2  ;;  %v128_v31 = vsel %vm116_vm4, %v127_v12, %v758_v4 }
  0x7a   :  { %167 = vrot.lane.b32.xlu1 %v122_v54, %s714_s15  ;;  %457 = vrot.lane.b32.xlu0 %v1057_v58, %s716_s8 }
  0x7c   :  { %v133_v49 = vpop.permute.xlu1 %132  ;;  %v130_v50 = vpop.permute.xlu0 %129 }
  0x7d   :  { %v134_v51 = vsel %vm116_vm4, %v133_v49, %v766_v8  ;;  %v131_v29 = vsel %vm116_vm4, %v130_v50, %v771_v9 }
  0x7e   :  { %289 = vrot.lane.b32.xlu1 %v982_v24, %s716_s8  ;;  %169 = vrot.lane.b32.xlu0 %v125_v16, %s714_s15 }
  0x80   :  { %v139_v53 = vpop.permute.xlu1 %138  ;;  %v136_v55 = vpop.permute.xlu0 %135 }
  0x81   :  { %v140_v58 = vsel %vm116_vm4, %v139_v53, %v783_v14  ;;  %v137_v5 = vsel %vm116_vm4, %v136_v55, %v841_v41 }
  0x82   :  { %175 = vrot.lane.b32.xlu1 %v134_v51, %s714_s15  ;;  %171 = vrot.lane.b32.xlu0 %v128_v31, %s714_s15 }
  0x84   :  { %v145_v56 = vpop.permute.xlu1 %144  ;;  %v142_v48 = vpop.permute.xlu0 %141 }
  0x85   :  { %v146_v62 = vsel %vm116_vm4, %v145_v56, %v868_v60  ;;  %v143_v7 = vsel %vm116_vm4, %v142_v48, %v873_v61 }
  0x86   :  { %179 = vrot.lane.b32.xlu1 %v140_v58, %s714_s15  ;;  %173 = vrot.lane.b32.xlu0 %v131_v29, %s714_s15 }
  0x88   :  { %v151_v63 = vpop.permute.xlu1 %150  ;;  %v148_v3 = vpop.permute.xlu0 %147 }
  0x89   :  { %v152_v32 = vsel %vm116_vm4, %v151_v63, %v907_v28  ;;  %v149_v15 = vsel %vm116_vm4, %v148_v3, %v912_v30 }
  0x8a   :  { %183 = vrot.lane.b32.xlu1 %v146_v62, %s714_s15  ;;  %177 = vrot.lane.b32.xlu0 %v137_v5, %s714_s15 }
  0x8c   :  { %v157_v13 = vpop.permute.xlu1 %156  ;;  %v154_v10 = vpop.permute.xlu0 %153 }
  0x8d   :  { %v158_v17 = vsel %vm116_vm4, %v157_v13, %v936_v47  ;;  %v155_v19 = vsel %vm116_vm4, %v154_v10, %v948_v52 }
  0x8e   :  { %187 = vrot.lane.b32.xlu1 %v152_v32, %s714_s15  ;;  %181 = vrot.lane.b32.xlu0 %v143_v7, %s714_s15 }
  0x90   :  { %v163_v22 = vpop.permute.xlu1 %162  ;;  %v160_v25 = vpop.permute.xlu0 %159 }
  0x91   :  { %v164_v20 = vsel %vm116_vm4, %v163_v22, %v977_v23  ;;  %v161_v18 = vsel %vm116_vm4, %v160_v25, %v982_v24 }
  0x92   :  { %191 = vrot.lane.b32.xlu1 %v158_v17, %s714_s15  ;;  %185 = vrot.lane.b32.xlu0 %v149_v15, %s714_s15 }
  0x94   :  { %v264_v26 = vpop.permute.xlu1 %263  ;;  %v262_v39 = vpop.permute.xlu0 %261 }
  0x96   :  { %195 = vrot.lane.b32.xlu1 %v164_v20, %s714_s15  ;;  %189 = vrot.lane.b32.xlu0 %v155_v19, %s714_s15 }
  0x98   :  { %v266_v33 = vpop.permute.xlu1 %265  ;;  %v434_v35 = vpop.permute.xlu0 %433 }
  0x9a   :  { %459 = vrot.lane.b32.xlu1 %v1079_v34, %s716_s8  ;;  %193 = vrot.lane.b32.xlu0 %v161_v18, %s714_s15  ;;  %s718_s15 = smov [#allocation3]  }
  0x9b   :  { %s658_s20 = sshll.u32 %s718_s15, 4  ;;  %s659_s20 = int_to_ptr.vmem [resolvable:$true] %s658_s20 }
  0x9c   :  { %v268_v6 = vpop.permute.xlu1 %267  ;;  %v438_v57 = vpop.permute.xlu0 %437  ;;  %s690_s21 = scalar_lea.vmem %s659_s20, 512  ;;  %p695_p1 = scmp.lt.s32.totalorder %s659_s20, %s659_s20 }
  0x9d   :  { %p691_p0 = scmp.ne.s32.totalorder %s659_s20, %s690_s21  ;;  %p696_p2 = scmp.lt.s32.totalorder %s690_s21, %s690_s21 }
  0x9e   :  { %291 = vrot.lane.b32.xlu0 %v977_v23, %s716_s8  ;;  %463 = vrot.lane.b32.xlu1 %v1086_v42, %s716_s8 }
  0x9f   :  { %p697_p3 = por %p696_p2, %p695_p1 }
  0xa0   :  { %v436_v37 = vpop.permute.xlu1 %435  ;;  %v272_v40 = vpop.permute.xlu0 %271 }
  0xa1   :  { %p698_p4 = pnand %p697_p3, %p691_p0 }
  0xa2   :  { %461 = vrot.lane.b32.xlu0 %v1111_v44, %s716_s8 }
  0xa4   :  { %v270_v38 = vpop.permute.xlu1 %269  ;;  %v1219_v43 = vpop.permute.xlu0 %441 }
  0xa8   :  { %v440_v34 = vpop.permute.xlu1 %439  ;;  %v276_v59 = vpop.permute.xlu0 %275 }
  0xac   :  { %v1221_v45 = vpop.permute.xlu1 %273  ;;  %v1223_v27 = vpop.permute.xlu0 %445 }
  0xb0   :  { %v444_v46 = vpop.permute.xlu1 %443  ;;  %v1227_v36 = vpop.permute.xlu0 %279 }
  0xb4   :  { %v1225_v42 = vpop.permute.xlu1 %277  ;;  %v1231_v11 = vpop.permute.xlu0 %449 }
  0xb8   :  { %v1229_v44 = vpop.permute.xlu1 %447  ;;  %v1235_v12 = vpop.permute.xlu0 %283 }
  0xbc   :  { %v1233_v21 = vpop.permute.xlu1 %281  ;;  %v1239_v16 = vpop.permute.xlu0 %453 }
  0xc0   :  { %v1237_v54 = vpop.permute.xlu1 %451  ;;  %v1243_v50 = vpop.permute.xlu0 %287 }
  0xc4   :  { %v1241_v49 = vpop.permute.xlu1 %285 }
  0xc8   :  { %v1245_v51 = vpop.permute.xlu1 %455 }
  0xe8   :  { %v166_v31 = vpop.permute.xlu0 %165 }
  0xe9   :  { %v197_v53 = vsel %vm116_vm4, %v166_v31, %v739_v0 }
  0xea   :  { %v309_v29 = vsub.f32 %v197_v53, %v262_v39 }
  0xec   :  { %v168_v55 = vpop.permute.xlu1 %167  ;;  %v1249_v58 = vpop.permute.xlu0 %457  ;;  %v325_v3 = vand.u32 2147483647, %v309_v29 }
  0xed   :  { %v198_v56 = vsel %vm116_vm4, %v168_v55, %v749_v2 }
  0xee   :  { %v310_v48 = vsub.f32 %v198_v56, %v264_v26  ;;  %v481_v15 = vmul.f32 %v434_v35, %v325_v3 }
  0xf0   :  { %v326_v62 = vand.u32 2147483647, %v310_v48  ;;  %v1253_v5 = vpop.permute.xlu1 %289  ;;  %v170_v63 = vpop.permute.xlu0 %169 }
  0xf1   :  { %v199_v32 = vsel %vm116_vm4, %v170_v63, %v744_v1 }
  0xf2   :  { %v311_v7 = vsub.f32 %v199_v32, %v266_v33  ;;  %v482_v13 = vmul.f32 %v436_v37, %v326_v62  ;;  %v570_v37 = vsel %vm569_vm5, %v481_v15, 0.0 }
  0xf4   :  { %v327_v10 = vand.u32 2147483647, %v311_v7  ;;  %v176_v0 = vpop.permute.xlu1 %175  ;;  %v172_v17 = vpop.permute.xlu0 %171  ;;  %v571_v18 = vsel %vm569_vm5, %v482_v13, 0.0 }
  0xf5   :  { %v202_v22 = vsel %vm116_vm4, %v176_v0, %v766_v8  ;;  %v200_v2 = vsel %vm116_vm4, %v172_v17, %v758_v4 }
  0xf6   :  { %v483_v20 = vmul.f32 %v438_v57, %v327_v10  ;;  %v314_v19 = vsub.f32 %v202_v22, %v272_v40  ;;  %v312_v25 = vsub.f32 %v200_v2, %v268_v6  ;;  %v572_v6 = vadd.f32 %v571_v18, %v570_v37 }
  0xf8   :  { %v330_v26 = vand.u32 2147483647, %v314_v19  ;;  %v328_v1 = vand.u32 2147483647, %v312_v25  ;;  %v180_v33 = vpop.permute.xlu1 %179  ;;  %v174_v39 = vpop.permute.xlu0 %173  ;;  %v573_v4 = vsel %vm569_vm5, %v483_v20, 0.0 }
  0xf9   :  { %v204_v35 = vsel %vm116_vm4, %v180_v33, %v783_v14  ;;  %v201_v8 = vsel %vm116_vm4, %v174_v39, %v771_v9  ;;  %v574_v62 = vadd.f32 %v573_v4, %v572_v6 }
  0xfa   :  { %v484_v31 = vmul.f32 %v440_v34, %v328_v1  ;;  %v316_v57 = vsub.f32 %v204_v35, %v276_v59  ;;  %v313_v40 = vsub.f32 %v201_v8, %v270_v38  ;;  %v486_v53 = vmul.f32 %v444_v46, %v330_v26 }
  0xfc   :  { %v575_v55 = vsel %vm569_vm5, %v484_v31, 0.0  ;;  %v329_v29 = vand.u32 2147483647, %v313_v40  ;;  %v184_v56 = vpop.permute.xlu1 %183  ;;  %v178_v48 = vpop.permute.xlu0 %177  ;;  %v332_v63 = vand.u32 2147483647, %v316_v57  ;;  %v579_v46 = vsel %vm569_vm5, %v486_v53, 0.0 }
  0xfd   :  { %v206_v14 = vsel %vm116_vm4, %v184_v56, %v868_v60  ;;  %v203_v9 = vsel %vm116_vm4, %v178_v48, %v841_v41  ;;  %v576_v59 = vadd.f32 %v575_v55, %v574_v62 }
  0xfe   :  { %v485_v3 = vmul.f32 %v1219_v43, %v329_v29  ;;  %v318_v34 = vsub.f32 %v206_v14, %v1227_v36  ;;  %v315_v38 = vsub.f32 %v203_v9, %v1221_v45  ;;  %v488_v0 = vmul.f32 %v1229_v44, %v332_v63  ;;  %v645_v9 = vld [vmem:[#allocation2] sm:$0xff] }
  0xff   :  { %649 = vst.msk [vmem:[#allocation3] sm:$0xff] %vm60_vm0, %v645_v9 }
 0x100   :  { %v577_v32 = vsel %vm569_vm5, %v485_v3, 0.0  ;;  %v331_v7 = vand.u32 2147483647, %v315_v38  ;;  %v188_v13 = vpop.permute.xlu1 %187  ;;  %v182_v10 = vpop.permute.xlu0 %181  ;;  %v334_v36 = vand.u32 2147483647, %v318_v34  ;;  %v583_v25 = vsel %vm569_vm5, %v488_v0, 0.0 }
 0x101   :  { %v578_v60 = vadd.f32 %v577_v32, %v576_v59  ;;  %v208_v41 = vsel %vm116_vm4, %v188_v13, %v907_v28  ;;  %v205_v43 = vsel %vm116_vm4, %v182_v10, %v873_v61  ;;  %v646_v3 = vld [vmem:[#allocation2 + $0x8] sm:$0xff]  ;;  %v648_v10 = vld [vmem:[#allocation2 + $0x18] sm:$0xff] }
 0x102   :  { %v487_v45 = vmul.f32 %v1223_v27, %v331_v7  ;;  %v320_v17 = vsub.f32 %v208_v41, %v1235_v12  ;;  %v317_v15 = vsub.f32 %v205_v43, %v1225_v42  ;;  %v490_v61 = vmul.f32 %v1237_v54, %v334_v36  ;;  %650 = vst.msk [vmem:[#allocation3 + $0x8] sm:$0xff] %vm60_vm0, %v646_v3  ;;  %v568_v41 = vld [vmem:[#allocation2 + $0x10] sm:$0xff] }
 0x103   :  { %v580_v22 = vadd.f32 %v579_v46, %v578_v60  ;;  %652 = vst.msk [vmem:[#allocation3 + $0x18] sm:$0xff] %vm60_vm0, %v648_v10 }
 0x104   :  { %v581_v2 = vsel %vm569_vm5, %v487_v45, 0.0  ;;  %v333_v20 = vand.u32 2147483647, %v317_v15  ;;  %v192_v19 = vpop.permute.xlu1 %191  ;;  %v186_v44 = vpop.permute.xlu0 %185  ;;  %v336_v26 = vand.u32 2147483647, %v320_v17  ;;  %v587_v54 = vsel %vm569_vm5, %v490_v61, 0.0 }
 0x105   :  { %v582_v18 = vadd.f32 %v581_v2, %v580_v22  ;;  %v207_v28 = vsel %vm116_vm4, %v186_v44, %v912_v30  ;;  %v210_v33 = vsel %vm116_vm4, %v192_v19, %v936_v47 }
 0x106   :  { %v489_v27 = vmul.f32 %v1231_v11, %v333_v20  ;;  %v319_v12 = vsub.f32 %v207_v28, %v1233_v21  ;;  %v492_v4 = vmul.f32 %v1245_v51, %v336_v26  ;;  %v322_v31 = vsub.f32 %v210_v33, %v1243_v50 }
 0x107   :  { %v584_v42 = vadd.f32 %v583_v25, %v582_v18 }
 0x108   :  { %v585_v1 = vsel %vm569_vm5, %v489_v27, 0.0  ;;  %v335_v39 = vand.u32 2147483647, %v319_v12  ;;  %v196_v37 = vpop.permute.xlu1 %195  ;;  %v190_v35 = vpop.permute.xlu0 %189 }
 0x109   :  { %v586_v8 = vadd.f32 %v585_v1, %v584_v42  ;;  %v209_v30 = vsel %vm116_vm4, %v190_v35, %v948_v52  ;;  %v591_v52 = vsel %vm569_vm5, %v492_v4, 0.0 }
 0x10a   :  { %v491_v11 = vmul.f32 %v1239_v16, %v335_v39  ;;  %v321_v21 = vsub.f32 %v209_v30, %v1241_v49  ;;  %v212_v16 = vsel %vm116_vm4, %v196_v37, %v977_v23  ;;  %v338_v49 = vand.u32 2147483647, %v322_v31 }
 0x10b   :  { %v588_v57 = vadd.f32 %v587_v54, %v586_v8 }
 0x10c   :  { %v589_v47 = vsel %vm569_vm5, %v491_v11, 0.0  ;;  %v337_v40 = vand.u32 2147483647, %v321_v21  ;;  %v194_v6 = vpop.permute.xlu0 %193  ;;  %v460_v51 = vpop.permute.xlu1 %459 }
 0x10d   :  { %v590_v53 = vadd.f32 %v589_v47, %v588_v57  ;;  %v211_v55 = vsel %vm116_vm4, %v194_v6, %v982_v24  ;;  %v494_v63 = vmul.f32 %v460_v51, %v338_v49 }
 0x10e   :  { %v493_v29 = vmul.f32 %v1249_v58, %v337_v40  ;;  %v323_v50 = vsub.f32 %v211_v55, %v1253_v5 }
 0x10f   :  { %v592_v56 = vadd.f32 %v591_v52, %v590_v53  ;;  %v595_v59 = vsel %vm569_vm5, %v494_v63, 0.0 }
 0x110   :  { %v593_v48 = vsel %vm569_vm5, %v493_v29, 0.0  ;;  %v292_v62 = vpop.permute.xlu0 %291  ;;  %v464_v34 = vpop.permute.xlu1 %463  ;;  %v339_v38 = vand.u32 2147483647, %v323_v50 }
 0x111   :  { %v324_v14 = vsub.f32 %v212_v16, %v292_v62  ;;  %v594_v24 = vadd.f32 %v593_v48, %v592_v56 }
 0x113   :  { %v340_v58 = vand.u32 2147483647, %v324_v14  ;;  %v596_v32 = vadd.f32 %v595_v59, %v594_v24 }
 0x114   :  { %v462_v23 = vpop.permute.xlu0 %461 }
 0x115   :  { %v496_v46 = vmul.f32 %v464_v34, %v340_v58  ;;  %v495_v5 = vmul.f32 %v462_v23, %v339_v38 }
 0x117   :  { %v597_v7 = vsel %vm569_vm5, %v495_v5, 0.0  ;;  %v599_v0 = vsel %vm569_vm5, %v496_v46, 0.0 }
 0x118   :  { %v598_v13 = vadd.f32 %v597_v7, %v596_v32 }
 0x11a   :  { %v600_v60 = vadd.f32 %v599_v0, %v598_v13 }
 0x11c   :  { %602 = vrot.lane.b32.xlu0 %v600_v60, %s717_s1 }
 0x18e   :  { %v603_v43 = vpop.permute.xlu0 %602 }
 0x18f   :  { %v605_v36 = vadd.f32 %v603_v43, %v568_v41 }
 0x191   :  { %606 = vst.msk [vmem:[#allocation2 + $0x10] sm:$0xff] %vm60_vm0, %v605_v36 }
 0x198   :  { %v647_v45 = vld [vmem:[#allocation2 + $0x10] sm:$0xff] }
 0x199   :  { %651 = vst.msk [vmem:[#allocation3 + $0x10] sm:$0xff] %vm60_vm0, %v647_v45 }
 0x19a   :  { %701 = shalt.err (!%p698_p4)
}
 0x19b   :  { %s702_s24 = scalar_lea.hbm %s1334_s2, 512 }
 0x19c   :  { %p703_p5 = scmp.ne.s32.totalorder %s1334_s2, %s702_s24  ;;  %p706_p6 = scmp.lt.u32.totalorder %s702_s24, %s1334_s2 }
 0x19e   :  { %p708_p7 = pnand %p706_p6, %p703_p5 }
 0x1a0   :  { %711 = shalt.err (!%p708_p7)
}
 0x1a1   :  { %s719_s29 = smov 128   ;;  %s720_s30 = smov 8  }
 0x1a2   :  { %664 = dma.vmem_to_hbm [thread:$0]  %s659_s20, 512, %s1334_s2, [#allocation4], %s719_s29, %s719_s29, %s720_s30  }
 0x1a3   :  { %712 = dma.done.wait [#allocation4], 512  }
 0x1a4   :  { %713 = vsyncadd [#allocation4], 4294966784 }
 0x1a5   :  { %668 = vsyncpa [#allocation4], 1 }

</bundles_post_ra>
